<compile_context>
chip_gen: v5e
topology: v5e:2x2
jax: 0.10.0
libtpu: 0.0.40
codegen_flags: <defaults>
</compile_context>

<pallas_src>
import functools
import math

import numpy as np
import jax
import jax.numpy as jnp
from jax.experimental import pallas as pl
from jax.experimental.pallas import tpu as pltpu


def _ihc_kernel_factory(mode):
    def ihc_kernel(x_ref, w_ref, o_ref):
        x = x_ref[...]                                  # (C, TT)
        if mode == 'abs_mean':
            x = jnp.abs(x)
        else:                                           # 'half_mean': (x > 0) * x
            x = jnp.maximum(x, jnp.zeros_like(x))
        # (H, C) @ (C, TT) -> (H, TT); rows of w are 1/window_len over the window.
        o_ref[...] = jnp.dot(
            w_ref[...], x, preferred_element_type=jnp.float32
        ).astype(o_ref.dtype)

    return ihc_kernel


@functools.lru_cache(maxsize=None)
def _pool_matrix(num_channels, window, stride):
    """(H, C) numpy matrix: row h averages channels [h*stride, h*stride+window) ∩ [0, C)."""
    num_heads = math.ceil(num_channels / stride)
    w = np.zeros((num_heads, num_channels), dtype=np.float32)
    for h in range(num_heads):
        start = h * stride
        stop = min(start + window, num_channels)
        w[h, start:stop] = 1.0 / float(stop - start)
    return w


def _chip_tuning():
    """Per-generation (bytes_per_step, vmem_budget_bytes).

    v7x: ~3.2 TB/s HBM hides more bytes per 0.35 us step -> fatter steps, but
    only 64 MiB VMEM per TC -> tighter budget.  v5e/v6e: 128 MiB VMEM.
    """
    try:
        kind = jax.devices()[0].device_kind.lower()
    except Exception:
        kind = ''
    if 'v7' in kind:
        return 4 << 20, 16 << 20
    return 2 << 20, 24 << 20


def _choose_time_tile(B, T, C, H, itemsize, out_itemsize, *,
                      bytes_per_step, vmem_budget, weight_buffers, max_tile=32768):
    """Lane-dense time tile hitting the per-step byte target within the VMEM budget."""
    per_col = C * itemsize + H * out_itemsize           # HBM bytes moved per time column
    tt = bytes_per_step // max(per_col, 1)
    # Double-buffered input + output blocks plus the resident pooling matrix.
    avail = vmem_budget - weight_buffers * H * C * itemsize
    tt = min(tt, max(avail, 0) // max(2 * per_col, 1))
    t128 = -(-T // 128) * 128
    tt = min(max(tt, 128), max_tile, t128)
    tt = max(128, (tt // 128) * 128)
    # Keep >= ~8 total grid steps so v7x megacore sharding and DMA/compute
    # double-buffering still have work to overlap; back the tile off if needed.
    min_steps = 8
    desired_t_steps = -(-min_steps // max(B, 1))
    if desired_t_steps > 1:
        tt_cap = max(128, (T // desired_t_steps) // 128 * 128)
        tt = min(tt, tt_cap)
    return tt


def inner_hair_cell(x, window, stride, mode='half_mean', time_tile=None, out_dtype=None):
    """x: (B, C, T) -> (B, H, T), H = ceil(C / stride).

    out_dtype: opt-in narrower output (e.g. jnp.bfloat16) for this HBM-bound op;
    default preserves x.dtype (and the module's numerics).
    """
    B, C, T = x.shape
    H = math.ceil(C / stride)
    out_dtype = x.dtype if out_dtype is None else jnp.dtype(out_dtype)
    w = jnp.asarray(_pool_matrix(C, window, stride), dtype=x.dtype)

    itemsize = jnp.dtype(x.dtype).itemsize
    out_itemsize = jnp.dtype(out_dtype).itemsize
    bytes_per_step, vmem_budget = _chip_tuning()

    # Pooling matrix: constant index_map -> fetched once; single-buffer it when
    # the dead second buffer would actually cost meaningful VMEM (large C/H).
    w_bytes = H * C * itemsize
    big_w = w_bytes >= (512 << 10)
    weight_buffers = 1 if big_w else 2
    if big_w:
        w_spec = pl.BlockSpec((H, C), lambda b, t: (0, 0), pipeline_mode=pl.Buffered(1))
    else:
        w_spec = pl.BlockSpec((H, C), lambda b, t: (0, 0))

    if time_tile is None:
        TT = _choose_time_tile(B, T, C, H, itemsize, out_itemsize,
                               bytes_per_step=bytes_per_step,
                               vmem_budget=vmem_budget,
                               weight_buffers=weight_buffers)
    else:
        TT = max(128, (int(time_tile) + 127) // 128 * 128)   # keep tiles lane-dense

    # No padding / slicing of x or out: the ragged boundary time block is safe
    # because output columns depend only on their own input column, and OOB
    # output stores are masked.
    grid = (B, pl.cdiv(T, TT))

    cost = pl.CostEstimate(
        flops=2 * B * H * C * T,
        transcendentals=0,
        bytes_accessed=B * C * T * itemsize + B * H * T * out_itemsize + H * C * itemsize,
    )

    needed_vmem = 2 * (C * itemsize + H * out_itemsize) * TT + weight_buffers * w_bytes
    vmem_limit = int(min(64 << 20, max(32 << 20, needed_vmem + (4 << 20))))

    kernel = _ihc_kernel_factory(mode)
    out = pl.pallas_call(
        kernel,
        out_shape=jax.ShapeDtypeStruct((B, H, T), out_dtype),
        grid_spec=pltpu.PrefetchScalarGridSpec(
            num_scalar_prefetch=0,
            grid=grid,
            in_specs=[
                pl.BlockSpec((pl.Squeezed(), C, TT), lambda b, t: (b, 0, t)),
                w_spec,
            ],
            out_specs=pl.BlockSpec((pl.Squeezed(), H, TT), lambda b, t: (b, 0, t)),
        ),
        compiler_params=pltpu.CompilerParams(
            dimension_semantics=("parallel", "parallel"),
            vmem_limit_bytes=vmem_limit,
        ),
        cost_estimate=cost,
    )(x, w)
    return out


def _reference(x, window, stride, mode='half_mean'):
    """Pure-JAX reference mirroring the PyTorch forward."""
    if mode == 'abs_mean':
        x = jnp.abs(x)
    else:
        x = (x > 0) * x
    outs = []
    for head in range(0, x.shape[1], stride):
        outs.append(jnp.mean(x[:, head:head + window, :], axis=1)[:, None, :])
    return jnp.concatenate(outs, axis=1)


if __name__ == "__main__":
    key = jax.random.PRNGKey(0)
    B, C, T = 2, 16, 300          # T not a multiple of 128: exercises the ragged boundary block
    window, stride = 4, 2

    x = jax.random.normal(key, (B, C, T), dtype=jnp.float32)

    # time_tile=128 forces multiple time tiles (and a partial last block) even
    # at this small T; production calls can omit it and let the per-generation
    # byte-target heuristic pick a fatter lane-dense tile.
    out = inner_hair_cell(x, window, stride, mode='half_mean', time_tile=128)
    out = jax.block_until_ready(out)

    H = math.ceil(C / stride)
    ref = _reference(x, window, stride, mode='half_mean')
    assert out.shape == ref.shape == (B, H, T)
    assert jnp.allclose(out, ref, atol=1e-5, rtol=1e-5)

    # Also exercise 'abs_mean' and the automatic tile-selection path.
    out2 = jax.block_until_ready(inner_hair_cell(x, window, stride, mode='abs_mean'))
    ref2 = _reference(x, window, stride, mode='abs_mean')
    assert out2.shape == ref2.shape
    assert jnp.allclose(out2, ref2, atol=1e-5, rtol=1e-5)

    print("KERNEL_OK")
</pallas_src>

<mosaic_0001>
module attributes {stable_mosaic.version = 11 : i64} {
  func.func @ihc_kernel(%arg0: i32, %arg1: i32, %arg2: memref<1x16x128xf32, #tpu.memory_space<vmem>>, %arg3: memref<8x16xf32, #tpu.memory_space<vmem>>, %arg4: memref<1x8x128xf32, #tpu.memory_space<vmem>>) attributes {dimension_semantics = [#tpu.dimension_semantics<parallel>, #tpu.dimension_semantics<parallel>], iteration_bounds = array<i64: 2, 3>, scalar_prefetch = 0 : i64, scratch_operands = 0 : i64, tpu.core_type = #tpu.core_type<tc>, window_params = [{transform_indices = @transform_0, window_bounds = array<i64: 1, 16, 128>}, {pipeline_mode = #tpu.pipeline_mode<synchronous>, transform_indices = @transform_1, window_bounds = array<i64: 8, 16>}, {transform_indices = @transform_2, window_bounds = array<i64: 1, 8, 128>}]} {
    %c0 = arith.constant 0 : index
    %c0_0 = arith.constant 0 : index
    %c0_1 = arith.constant 0 : index
    %0 = vector.load %arg2[%c0, %c0_0, %c0_1] : memref<1x16x128xf32, #tpu.memory_space<vmem>>, vector<1x16x128xf32>
    %1 = vector.shape_cast %0 : vector<1x16x128xf32> to vector<16x128xf32>
    %cst = arith.constant 0.000000e+00 : f32
    %2 = vector.broadcast %cst : f32 to vector<16x128xf32>
    %3 = arith.maximumf %1, %2 : vector<16x128xf32>
    %c0_2 = arith.constant 0 : index
    %c0_3 = arith.constant 0 : index
    %4 = vector.load %arg3[%c0_2, %c0_3] : memref<8x16xf32, #tpu.memory_space<vmem>>, vector<8x16xf32>
    %cst_4 = arith.constant dense<0.000000e+00> : vector<8x128xf32>
    %5 = tpu.matmul %4, %3, %cst_4 {dimension_numbers = #tpu.dot_dimension_numbers<[1], [0], [0], [1], [0, 0, 1, 1], [], []>} : vector<8x16xf32>, vector<16x128xf32>, vector<8x128xf32> -> vector<8x128xf32>
    %c0_5 = arith.constant 0 : index
    %c0_6 = arith.constant 0 : index
    %c0_7 = arith.constant 0 : index
    %6 = vector.load %arg4[%c0_5, %c0_6, %c0_7] : memref<1x8x128xf32, #tpu.memory_space<vmem>>, vector<1x8x128xf32>
    %7 = vector.shape_cast %6 : vector<1x8x128xf32> to vector<8x128xf32>
    %8 = vector.shape_cast %5 : vector<8x128xf32> to vector<1x8x128xf32>
    tpu.vector_store %arg4[%c0_5, %c0_6, %c0_7], %8 {strides = array<i32>} : memref<1x8x128xf32, #tpu.memory_space<vmem>>, vector<1x8x128xf32>,
    return
  }
  func.func @transform_0(%arg0: i32, %arg1: i32) -> (i32, i32, i32) {
    %c0_i32 = arith.constant 0 : i32
    %c0_i32_0 = arith.constant 0 : i32
    return %arg0, %c0_i32, %arg1 : i32, i32, i32
  }
  func.func @transform_1(%arg0: i32, %arg1: i32) -> (i32, i32) {
    %c0_i32 = arith.constant 0 : i32
    %c0_i32_0 = arith.constant 0 : i32
    %c0_i32_1 = arith.constant 0 : i32
    return %c0_i32, %c0_i32_0 : i32, i32
  }
  func.func @transform_2(%arg0: i32, %arg1: i32) -> (i32, i32, i32) {
    %c0_i32 = arith.constant 0 : i32
    %c0_i32_0 = arith.constant 0 : i32
    return %arg0, %c0_i32, %arg1 : i32, i32, i32
  }
}

</mosaic_0001>

<bundles_post_ra>
// kernel: tpu_custom_call.1
= control target key start
LH: loop header
LB: loop body
LE: loop exit
PB: predicated region body
PF: predicated region fallthrough
CT: control target
= control target key end

     0   :  { %s806_s0 = inlined_call_operand.hbm [shape: f32[2,16,300], index: 0, kind: input, shape index: {}]   ;;  %s807_s1 = inlined_call_operand.hbm [shape: f32[8,16], index: 1, kind: input, shape index: {}]   ;;  %s808_s2 = inlined_call_operand.hbm [shape: f32[2,8,300], index: 2, kind: output, shape index: {}]  }
   0x1   :  { %816 = sst [smem:[#allocation16_spill]] %s807_s1 }
   0x2   :  { %817 = sst [smem:[#allocation17_spill]] %s808_s2 }
   0x3   :  { %7 = vsyncpa [#allocation3], 0 }
   0x4   :  { %9 = vsyncpa [#allocation3 + $0x1], 0 }
   0x5   :  { %10 = vsyncpa [#allocation6], 0 }
   0x6   :  { %11 = vsyncpa [#allocation4], 0 }
   0x7   :  { %13 = vsyncpa [#allocation4 + $0x1], 0  ;;  %s632_s9 = smov 0   ;;  %s634_s10 = smov 0  }
   0x8   :  { %s636_s11 = smov 0   ;;  %s638_s12 = smov 0  }
   0x9   :  { %s640_s13 = smov 0   ;;  %s642_s14 = smov 0  }
   0xa   :  { %s644_s15 = smov 0   ;;  %s646_s16 = smov 0  }
   0xb LB: > { %818 = sst [smem:[#allocation11_spill]] %s583_s9  ;;  %s339_s17 = sadd.s32 4294967295, %s611_s16   ;;  %s611_s16 = sphi %s646_s16, %s19_s16   ;;  %s607_s15 = sphi %s644_s15, %s843_s15   ;;  %s603_s14 = sphi %s642_s14, %s838_s14   ;;  %s599_s13 = sphi %s640_s13, %s842_s13   ;;  %s595_s12 = sphi %s638_s12, %s837_s12   ;;  %s591_s11 = sphi %s636_s11, %s841_s11   ;;  %s587_s10 = sphi %s634_s10, %s840_s10   ;;  %s583_s9 = sphi %s632_s9, %s839_s9  }
   0xc   : > { %819 = sst [smem:[#allocation12_spill]] %s603_s14  ;;  %s340_s18 = sadd.s32 4294967294, %s611_s16  }
   0xd   : > { %820 = sst [smem:[#allocation13_spill]] %s611_s16  ;;  %p47_p0 = scmp.ne.s32.totalorder %s591_s11, %s587_s10 }
   0xe   : > { %p48_p1 = scmp.eq.s32.totalorder %s611_s16, 0  ;;  %p53_p2 = scmp.ne.s32.totalorder %s587_s10, %s583_s9 }
   0xf   : > { %p680_p3 = scmp.eq.s32.totalorder %s339_s17, 0  ;;  %p100_p4 = scmp.eq.s32.totalorder %s339_s17, 5 }
  0x10   : > { %p684_p5 = por %p48_p1, %p47_p0  ;;  %p106_p6 = scmp.eq.s32.totalorder %s340_s18, 5 }
  0x11   : > { %p690_p7 = por %p680_p3, %p53_p2  ;;  %p694_p8 = por %p100_p4, %p47_p0 }
  0x12   : > { %p698_p9 = por %p106_p6, %p53_p2  ;;  %p341_p10 = scmp.ge.s32.totalorder %s611_s16, 1 }
  0x13   : > { %p113_p11 = scmp.lt.s32.totalorder %s611_s16, 7  ;;  %s827_s1 = sld [smem:[#allocation16_spill]] }
  0x14   : > { %s825_s24 = scalar_select %p698_p9, 1, 0 }
  0x15   : > { %p707_p12 = pnand %p341_p10, %p113_p11  ;;  %s613_s29 = smov [#allocation5]  }
  0x16   : > { %826 = sst [smem:[#allocation14_spill]] %s825_s24  ;;  %s127_s30 = sshll.u32 %s613_s29, 4  ;;  %s128_s30 = int_to_ptr.vmem [resolvable:$true] %s127_s30 }
  0x17   : > { %p365_p13 = pneg %p707_p12  ;;  %p378_p0 = scmp.lt.s32.totalorder %s611_s16, 6 }
  0x18   : > { %s28_s4 = sadd.s32 1, %s603_s14  ;;  %s31_s5 = sadd.s32 1, %s607_s15 }
  0x19   : > { %s125_s27 = sshll.u32 %s827_s1, 4  ;;  %p366_p1 = pnand %p365_p13, %p680_p3  ;;  %s126_s27 = int_to_ptr.hbm [resolvable:$true] %s125_s27 }
  0x1a   : > { %p718_p2 = pnand %p378_p0, %p684_p5  ;;  %p29_p4 = scmp.ge.s32.totalorder %s28_s4, 3 }
  0x1b   : > { %368 = dma.hbm_to_vmem [thread:$0]  (!%p366_p1), %s126_s27, 128, %s128_s30, [#allocation6]  }
  0x1c   : > { %s138_s6 = sand.u32 1, %s591_s11   ;;  %s355_s7 = smul.u32 6, %s607_s15 }
  0x1d   : > { %s845_s4 = smov (%p29_p4, %s28_s4), 0  ;;  %s847_s5 = smov (!%p29_p4, %s31_s5), %s607_s15 }
  0x1e   : > { %830 = sst [smem:[#allocation15_spill]] %s845_s4  ;;  %s36_s8 = ssub.s32 %s603_s14, %s845_s4 }
  0x1f   : > { %p33_p6 = scmp.ge.s32.totalorder %s847_s5, 2  ;;  %s344_s17 = sshll.u32 %s138_s6, 4 }
  0x20   : > { %s146_s18 = sadd.s32 %s603_s14, %s355_s7  ;;  %s142_s25 = scalar_lea.vmem [#allocation2], %s344_s17 }
  0x21   : > { %s849_s5 = smov (%p33_p6, %s847_s5), 0  ;;  %s345_s21 = sshll.u32 %s146_s18, 3 }
  0x22   : > { %s151_s26 = sshll.u32 %s142_s25, 4  ;;  %s35_s27 = ssub.s32 %s607_s15, %s849_s5  ;;  %s152_s26 = int_to_ptr.vmem [resolvable:$true] %s151_s26 }
  0x23   : > { %s148_s19 = scalar_lea.hbm %s806_s0, %s345_s21  ;;  %s37_s1 = sor.u32 %s36_s8, %s35_s27 }
  0x24   : > { %s149_s24 = sshll.u32 %s148_s19, 4  ;;  %p38_p5 = scmp.eq.s32.totalorder %s37_s1, 0  ;;  %s150_s24 = int_to_ptr.hbm [resolvable:$true] %s149_s24 }
  0x25   : > { %s831_s4 = sadd.s32 1, %s591_s11  ;;  %s139_s7 = scalar_lea.sflag [#allocation3], %s138_s6 }
  0x26   : > { %s742_s9 = scalar_select %p38_p5, %s591_s11, %s831_s4  }
  0x27   : > { %s614_s14 = smov 384   ;;  %s615_s16 = smov 128  }
  0x28   : > { %s616_s2 = smov 8   ;;  %163 = sbr.rel (%p707_p12) target bundleno = 183 (0xb7), region = 28 }
  0x29   : > { %372 = dma.hbm_to_vmem [thread:$0]  (!%p718_p2), %s150_s24, 256, %s152_s26, %s139_s7, %s614_s14, %s615_s16, %s616_s2  }
  0x2a   : > { %s749_s17 = sand.u32 (!%p707_p12), 1, %s587_s10  }
  0x2b   : > { %s347_s1 = sshll.u32 (!%p707_p12), %s749_s17, 4  ;;  %s166_s19 = scalar_lea.sflag (!%p707_p12), [#allocation3], %s749_s17 }
  0x2c   : > { %s169_s8 = scalar_lea.vmem (!%p707_p12), [#allocation2], %s347_s1 }
  0x2d   : > { %570 = dma.done.wait (%p690_p7), %s166_s19, 256  }
  0x2e   : > { %572 = vsyncadd (%p690_p7), %s166_s19, 4294967040 }
  0x2f   : > { %574 = dma.done.wait (%p680_p3), [#allocation6], 128  }
  0x30   : > { %576 = vsyncadd (%p680_p3), [#allocation6], 4294967168  ;;  %v197_v0 = vld [vmem:[%s169_s8 + $0x8] sm:$0xff]  ;;  %v196_v1 = vld [vmem:[%s169_s8] sm:$0xff]  ;;  %vm201_vm0 = vcmask 130048   ;;  %s356_s2 = smul.u32 3, %s599_s13 }
  0x31   : > { %v199_v2 = vmax.f32 %v197_v0, 0.0  ;;  %v198_v3 = vmax.f32 %v196_v1, 0.0  ;;  %v200_v4 = vld [vmem:[#allocation5] sm:$0xff]  ;;  %s349_s16 = sshll.u32 %s749_s17, 3  ;;  %s832_s28 = sld [smem:[#allocation17_spill]] }
  0x32   : > { %s237_s14 = sadd.s32 %s595_s12, %s356_s2  ;;  %s195_s4 = scalar_lea.vmem [#allocation7], %s349_s16 }
  0x33   : > { %219 = vmatpush.msra.mxu0 %v199_v2  ;;  %s352_s22 = sshll.u32 %s237_s14, 3  ;;  %s241_s6 = sshll.u32 %s195_s4, 4  ;;  %s242_s6 = int_to_ptr.vmem [resolvable:$true] %s241_s6 }
  0x34   : > { %s227_s21 = scalar_lea.sflag [#allocation4], %s749_s17 }
  0x35   : > { %220 = vmatpush.msra.mxu0 %v198_v3 }
  0x36   : > { %350 = vmatmul.msk.f32.vlgmr.msra.gmra.mxu0 %vm201_vm0, %v200_v4 }
  0x37   : > { %s239_s3 = scalar_lea.hbm %s832_s28, %s352_s22  ;;  %s529_s27 = scalar_lea.hbm %s832_s28, 48 }
  0x38   : > { %s243_s18 = sshll.u32 %s239_s3, 4  ;;  %s244_s18 = int_to_ptr.hbm [resolvable:$true] %s243_s18 }
  0x39   : > { %s523_s25 = sshra.s32 %s244_s18, 4  ;;  %s524_s25 = int_to_ptr.hbm [resolvable:$true] %s523_s25 }
  0x3a   : > { %s525_s26 = scalar_lea.hbm %s524_s25, 8  ;;  %p530_p11 = scmp.lt.s32.totalorder %s524_s25, %s832_s28 }
  0x3b   : > { %p526_p3 = scmp.ne.s32.totalorder %s524_s25, %s525_s26  ;;  %p531_p12 = scmp.lt.s32.totalorder %s529_s27, %s525_s26 }
  0x3d   : > { %p527_p7 = pnand %p526_p3, %p694_p8  ;;  %p532_p13 = por %p531_p12, %p530_p11 }
  0x3f   : > { %p528_p10 = pneg %p527_p7 }
  0x41   : > { %p533_p0 = pnand %p532_p13, %p528_p10 }
  0xb3   : > { %v222_v5 = vpop.f32.mrf.mxu0 }
  0xb4   : > { %225 = vst [vmem:[%s195_s4] sm:$0xff] %v222_v5 }
  0xb5   : > { %536 = shalt.err (!%p533_p0)
}
  0xb6   : > { %363 = dma.vmem_to_hbm [thread:$0]  (%p694_p8), %s242_s6, 128, %s244_s18, %s227_s21  }
  0xb7 PF: > { %s833_s7 = sld [smem:[#allocation13_spill]] }
  0xb8   : > { %s834_s17 = sld [smem:[#allocation11_spill]] }
  0xbd   : > { %p380_p1 = scmp.ge.s32.totalorder %s833_s7, 2 }
  0xbe   : > { %s255_s19 = sand.u32 1, %s834_s17  }
  0xbf   : > { %p374_p2 = pnand %p380_p1, %p698_p9  ;;  %s256_s8 = scalar_lea.sflag [#allocation4], %s255_s19 }
  0xc1   : > { %p375_p4 = pneg %p374_p2 }
  0xc3   : > { %578 = dma.done.wait (%p375_p4), %s256_s8, 128  }
  0xc4   : > { %580 = vsyncadd (%p375_p4), %s256_s8, 4294967168  ;;  %s19_s16 = sadd.s32 1, %s833_s7   ;;  %s836_s2 = smov %s742_s9 }
  0xc5   : > { %p16_p6 = scmp.ge.s32.totalorder %s19_s16, 8   ;;  %s837_s12 = sld [smem:[#allocation12_spill]] }
  0xc6   : > { %s838_s14 = sld [smem:[#allocation15_spill]]  ;;  %s839_s9 = smov %s587_s10 }
  0xc7   : > { %s840_s10 = smov %s591_s11  ;;  %s841_s11 = smov %s836_s2 }
  0xc8   : > { %s842_s13 = smov %s607_s15  ;;  %s843_s15 = smov %s849_s5 }
  0xc9   :  { %18 = sbr.rel (!%p16_p6) target bundleno = 11 (0xb), region = 77 }
  0xce   :  { %262 = vsyncpa [#allocation3], 1 }
  0xcf   :  { %264 = vsyncpa [#allocation3 + $0x1], 1 }
  0xd0   :  { %265 = vsyncpa [#allocation6], 1 }
  0xd1   :  { %266 = vsyncpa [#allocation4], 1 }
  0xd2   :  { %268 = vsyncpa [#allocation4 + $0x1], 1 }

</bundles_post_ra>
